<compile_context>
chip_gen: v6e
topology: v6e:2x2x1
jax: 0.10.0
libtpu: 0.0.40
codegen_flags: <defaults>
</compile_context>

<pallas_src>
import jax
import jax.numpy as jnp
from jax.experimental import pallas as pl
from jax.experimental.pallas import tpu as pltpu

HIDDEN = 128
LEAKY_SLOPE = 0.01  # F.leaky_relu default negative_slope


def _round_up(x, m):
    return (x + m - 1) // m * m


def ecg_head_kernel(x_ref, w1_ref, b1_ref, w3_ref, b3_ref, o_ref):
    # x_ref: (TB, 128) ; w1_ref: (128, 128) ; b1_ref: (1, 128)
    # w3_ref: (128, n_out) ; b3_ref: (1, n_out) ; o_ref: (TB, n_out)
    x = x_ref[...]

    # head_1: Linear(128, 128) on the MXU, f32 accumulation.
    h = jnp.dot(x, w1_ref[...], preferred_element_type=jnp.float32) + b1_ref[...]

    # F.leaky_relu (negative_slope = 0.01)
    h = jnp.where(h > 0, h, LEAKY_SLOPE * h)

    # dropout: identity (eval mode)

    # head_3: Linear(128, n_out)
    y = jnp.dot(h.astype(w3_ref.dtype), w3_ref[...],
                preferred_element_type=jnp.float32) + b3_ref[...]

    o_ref[...] = y.astype(o_ref.dtype)


def ecg_head_forward(x, w1, b1, w3, b3, *, block_b=2048):
    """x: (..., 128). Weights pre-transposed to (in, out). Returns (..., n_out)."""
    assert x.shape[-1] == HIDDEN, x.shape
    lead = x.shape[:-1]
    x2 = x.reshape(-1, HIDDEN)
    B = x2.shape[0]
    n_out = w3.shape[1]

    # Batch tile: multiple of 8 sublanes, capped at block_b.  Uneven last tile
    # is handled by the grid overhang (no pad / slice copies).
    tb = min(block_b, _round_up(B, 8))
    grid = (pl.cdiv(B, tb),)

    cost = pl.CostEstimate(
        flops=int(2 * B * HIDDEN * HIDDEN + 2 * B * HIDDEN * n_out),
        transcendentals=0,
        bytes_accessed=int(B * HIDDEN * 4            # x in
                           + B * n_out * 4           # out
                           + HIDDEN * HIDDEN * 4     # w1
                           + HIDDEN * n_out * 4      # w3
                           + (HIDDEN + n_out) * 4),  # biases
    )

    out = pl.pallas_call(
        ecg_head_kernel,
        out_shape=jax.ShapeDtypeStruct((B, n_out), x2.dtype),
        grid_spec=pl.GridSpec(
            grid=grid,
            in_specs=[
                pl.BlockSpec((tb, HIDDEN), lambda i: (i, 0)),       # x: tiled over batch
                pl.BlockSpec((HIDDEN, HIDDEN), lambda i: (0, 0)),   # w1: resident
                pl.BlockSpec((1, HIDDEN), lambda i: (0, 0)),        # b1: resident
                pl.BlockSpec((HIDDEN, n_out), lambda i: (0, 0)),    # w3: resident
                pl.BlockSpec((1, n_out), lambda i: (0, 0)),         # b3: resident
            ],
            out_specs=pl.BlockSpec((tb, n_out), lambda i: (i, 0)),
        ),
        compiler_params=pltpu.CompilerParams(
            dimension_semantics=("parallel",)),
        cost_estimate=cost,
    )(x2, w1, b1, w3, b3)

    return out.reshape(*lead, n_out)


def init_params(key, n_out=1):
    """Deterministic init mirroring nn.Linear shapes (torch weight is (out, in);
    we transpose to (in, out) for the kernel)."""
    k1, k2, k3, k4 = jax.random.split(key, 4)
    bound1 = 1.0 / jnp.sqrt(HIDDEN)
    w1_t = jax.random.uniform(k1, (HIDDEN, HIDDEN), jnp.float32, -bound1, bound1)
    b1 = jax.random.uniform(k2, (1, HIDDEN), jnp.float32, -bound1, bound1)
    bound3 = 1.0 / jnp.sqrt(HIDDEN)
    w3_t = jax.random.uniform(k3, (n_out, HIDDEN), jnp.float32, -bound3, bound3)
    b3 = jax.random.uniform(k4, (1, n_out), jnp.float32, -bound3, bound3)
    # transpose torch (out, in) -> (in, out)
    return w1_t.T, b1, w3_t.T, b3


def ref_forward(x, w1, b1, w3, b3):
    h = x @ w1 + b1
    h = jnp.where(h > 0, h, LEAKY_SLOPE * h)
    return h @ w3 + b3


if __name__ == "__main__":
    key = jax.random.PRNGKey(0)
    kx, kp = jax.random.split(key)

    B, n_out = 8, 1
    x = jax.random.normal(kx, (B, HIDDEN), jnp.float32)
    w1, b1, w3, b3 = init_params(kp, n_out=n_out)

    out = jax.block_until_ready(ecg_head_forward(x, w1, b1, w3, b3))
    ref = ref_forward(x, w1, b1, w3, b3)
    assert out.shape == (B, n_out), out.shape
    assert jnp.allclose(out, ref, atol=1e-4, rtol=1e-4), (
        f"max abs err {jnp.max(jnp.abs(out - ref))}")

    # Batch that does not divide the tile (exercises the masked overhang write).
    B2 = 1030
    x2 = jax.random.normal(kx, (B2, HIDDEN), jnp.float32)
    out2 = jax.block_until_ready(ecg_head_forward(x2, w1, b1, w3, b3))
    ref2 = ref_forward(x2, w1, b1, w3, b3)
    assert out2.shape == (B2, n_out), out2.shape
    assert jnp.allclose(out2, ref2, atol=1e-4, rtol=1e-4), (
        f"max abs err {jnp.max(jnp.abs(out2 - ref2))}")

    # Multi-step grid (4 tiles) with a ragged last tile.
    B3 = 2000
    x3 = jax.random.normal(kx, (B3, HIDDEN), jnp.float32)
    out3 = jax.block_until_ready(ecg_head_forward(x3, w1, b1, w3, b3, block_b=512))
    ref3 = ref_forward(x3, w1, b1, w3, b3)
    assert out3.shape == (B3, n_out), out3.shape
    assert jnp.allclose(out3, ref3, atol=1e-4, rtol=1e-4), (
        f"max abs err {jnp.max(jnp.abs(out3 - ref3))}")

    print("KERNEL_OK")
</pallas_src>

<mosaic_0001>
module attributes {stable_mosaic.version = 11 : i64} {
  func.func @ecg_head_kernel(%arg0: i32, %arg1: memref<8x128xf32, #tpu.memory_space<vmem>>, %arg2: memref<128x128xf32, #tpu.memory_space<vmem>>, %arg3: memref<1x128xf32, #tpu.memory_space<vmem>>, %arg4: memref<128x1xf32, #tpu.memory_space<vmem>>, %arg5: memref<1x1xf32, #tpu.memory_space<vmem>>, %arg6: memref<8x1xf32, #tpu.memory_space<vmem>>) attributes {dimension_semantics = [#tpu.dimension_semantics<parallel>], iteration_bounds = array<i64: 1>, scalar_prefetch = 0 : i64, scratch_operands = 0 : i64, tpu.core_type = #tpu.core_type<tc>, window_params = [{transform_indices = @transform_0, window_bounds = array<i64: 8, 128>}, {pipeline_mode = #tpu.pipeline_mode<synchronous>, transform_indices = @transform_1, window_bounds = array<i64: 128, 128>}, {pipeline_mode = #tpu.pipeline_mode<synchronous>, transform_indices = @transform_2, window_bounds = array<i64: 1, 128>}, {pipeline_mode = #tpu.pipeline_mode<synchronous>, transform_indices = @transform_3, window_bounds = array<i64: 128, 1>}, {pipeline_mode = #tpu.pipeline_mode<synchronous>, transform_indices = @transform_4, window_bounds = array<i64: 1, 1>}, {transform_indices = @transform_5, window_bounds = array<i64: 8, 1>}]} {
    %c0 = arith.constant 0 : index
    %c0_0 = arith.constant 0 : index
    %0 = vector.load %arg1[%c0, %c0_0] : memref<8x128xf32, #tpu.memory_space<vmem>>, vector<8x128xf32>
    %c0_1 = arith.constant 0 : index
    %c0_2 = arith.constant 0 : index
    %1 = vector.load %arg2[%c0_1, %c0_2] : memref<128x128xf32, #tpu.memory_space<vmem>>, vector<128x128xf32>
    %cst = arith.constant dense<0.000000e+00> : vector<8x128xf32>
    %2 = tpu.matmul %0, %1, %cst {dimension_numbers = #tpu.dot_dimension_numbers<[1], [0], [0], [1], [0, 0, 1, 1], [], []>} : vector<8x128xf32>, vector<128x128xf32>, vector<8x128xf32> -> vector<8x128xf32>
    %c0_3 = arith.constant 0 : index
    %c0_4 = arith.constant 0 : index
    %3 = vector.load %arg3[%c0_3, %c0_4] : memref<1x128xf32, #tpu.memory_space<vmem>>, vector<1x128xf32>
    %4 = vector.broadcast %3 : vector<1x128xf32> to vector<8x128xf32>
    %5 = arith.addf %2, %4 : vector<8x128xf32>
    %cst_5 = arith.constant 0.000000e+00 : f32
    %6 = vector.broadcast %cst_5 : f32 to vector<8x128xf32>
    %7 = arith.cmpf ogt, %5, %6 : vector<8x128xf32>
    %cst_6 = arith.constant 0.00999999977 : f32
    %8 = vector.broadcast %cst_6 : f32 to vector<8x128xf32>
    %9 = arith.mulf %8, %5 : vector<8x128xf32>
    %10 = arith.select %7, %5, %9 : vector<8x128xi1>, vector<8x128xf32>
    %c0_7 = arith.constant 0 : index
    %c0_8 = arith.constant 0 : index
    %11 = vector.load %arg4[%c0_7, %c0_8] : memref<128x1xf32, #tpu.memory_space<vmem>>, vector<128x1xf32>
    %cst_9 = arith.constant dense<0.000000e+00> : vector<8x1xf32>
    %12 = tpu.matmul %10, %11, %cst_9 {dimension_numbers = #tpu.dot_dimension_numbers<[1], [0], [0], [1], [0, 0, 1, 1], [], []>} : vector<8x128xf32>, vector<128x1xf32>, vector<8x1xf32> -> vector<8x1xf32>
    %c0_10 = arith.constant 0 : index
    %c0_11 = arith.constant 0 : index
    %13 = vector.load %arg5[%c0_10, %c0_11] : memref<1x1xf32, #tpu.memory_space<vmem>>, vector<1x1xf32>
    %14 = vector.broadcast %13 : vector<1x1xf32> to vector<8x1xf32>
    %15 = arith.addf %12, %14 : vector<8x1xf32>
    %c0_12 = arith.constant 0 : index
    %c0_13 = arith.constant 0 : index
    %16 = vector.load %arg6[%c0_12, %c0_13] : memref<8x1xf32, #tpu.memory_space<vmem>>, vector<8x1xf32>
    tpu.vector_store %arg6[%c0_12, %c0_13], %15 {strides = array<i32>} : memref<8x1xf32, #tpu.memory_space<vmem>>, vector<8x1xf32>,
    return
  }
  func.func @transform_0(%arg0: i32) -> (i32, i32) {
    %c0_i32 = arith.constant 0 : i32
    %c0_i32_0 = arith.constant 0 : i32
    return %arg0, %c0_i32 : i32, i32
  }
  func.func @transform_1(%arg0: i32) -> (i32, i32) {
    %c0_i32 = arith.constant 0 : i32
    %c0_i32_0 = arith.constant 0 : i32
    %c0_i32_1 = arith.constant 0 : i32
    return %c0_i32, %c0_i32_0 : i32, i32
  }
  func.func @transform_2(%arg0: i32) -> (i32, i32) {
    %c0_i32 = arith.constant 0 : i32
    %c0_i32_0 = arith.constant 0 : i32
    %c0_i32_1 = arith.constant 0 : i32
    return %c0_i32, %c0_i32_0 : i32, i32
  }
  func.func @transform_3(%arg0: i32) -> (i32, i32) {
    %c0_i32 = arith.constant 0 : i32
    %c0_i32_0 = arith.constant 0 : i32
    %c0_i32_1 = arith.constant 0 : i32
    return %c0_i32, %c0_i32_0 : i32, i32
  }
  func.func @transform_4(%arg0: i32) -> (i32, i32) {
    %c0_i32 = arith.constant 0 : i32
    %c0_i32_0 = arith.constant 0 : i32
    %c0_i32_1 = arith.constant 0 : i32
    return %c0_i32, %c0_i32_0 : i32, i32
  }
  func.func @transform_5(%arg0: i32) -> (i32, i32) {
    %c0_i32 = arith.constant 0 : i32
    %c0_i32_0 = arith.constant 0 : i32
    return %arg0, %c0_i32 : i32, i32
  }
}

</mosaic_0001>

<bundles_post_ra>
// kernel: tpu_custom_call.1
= control target key start
LH: loop header
LB: loop body
LE: loop exit
PB: predicated region body
PF: predicated region fallthrough
CT: control target
= control target key end

     0   :  { %s537_s0 = inlined_call_operand.hbm [shape: f32[8,128], index: 0, kind: input, shape index: {}]   ;;  %s538_s1 = inlined_call_operand.vmem [shape: f32[128,128], index: 1, kind: input, shape index: {}]   ;;  %s539_s2 = inlined_call_operand.vmem [shape: f32[1,128], index: 2, kind: input, shape index: {}]   ;;  %s540_s3 = inlined_call_operand.vmem [shape: f32[128,1], index: 3, kind: input, shape index: {}]   ;;  %s541_s4 = inlined_call_operand.<no memory space> [shape: f32[1,1], index: 4, kind: input, shape index: {}]   ;;  %s542_s5 = inlined_call_operand.vmem [shape: f32[8,1], index: 5, kind: output, shape index: {}]  }
   0x1   :  { %v10_v0 = vstv %s541_s4 }
   0x2   :  { %11 = vst [vmem:[#allocation2] sm:$0x1] %v10_v0 }
   0x3   :  { %12 = vsyncpa [#allocation4], 0  ;;  %s362_s20 = smov [#allocation3]  }
   0x4   :  { %s19_s21 = sshll.u32 %s362_s20, 4  ;;  %s20_s21 = int_to_ptr.vmem [resolvable:$true] %s19_s21 }
   0x5   :  { %s348_s22 = scalar_lea.vmem %s20_s21, 128  ;;  %p353_p1 = scmp.lt.s32.totalorder %s20_s21, %s20_s21 }
   0x6   :  { %p349_p0 = scmp.ne.s32.totalorder %s20_s21, %s348_s22  ;;  %p354_p2 = scmp.lt.s32.totalorder %s348_s22, %s348_s22 }
   0x8   :  { %p355_p3 = por %p354_p2, %p353_p1 }
   0xa   :  { %p356_p4 = pnand %p355_p3, %p349_p0 }
   0xc   :  { %359 = shalt.err (!%p356_p4)
}
   0xd   :  { %22 = dma.hbm_to_vmem [thread:$0]  %s537_s0, 128, %s20_s21, [#allocation4]  }
   0xe   :  { %360 = dma.done.wait [#allocation4], 128  }
   0xf   :  { %361 = vsyncadd [#allocation4], 4294967168  ;;  %v363_v1 = vmov 0.0   ;;  %vm364_vm0 = vmmov 0   ;;  %v50_v2 = vld [vmem:[%s538_s1 + $0x78] sm:$0xff]  ;;  %v49_v3 = vld [vmem:[%s538_s1 + $0x70] sm:$0xff] }
  0x10   :  { %267 = vmatprep.subr.mxu0 %v363_v1  ;;  %299 = vmatprep.mubr.msk.f32.mxu0 %vm364_vm0, %v363_v1  ;;  %v48_v4 = vld [vmem:[%s538_s1 + $0x68] sm:$0xff]  ;;  %v47_v5 = vld [vmem:[%s538_s1 + $0x60] sm:$0xff]  ;;  %v146_v6 = vld [vmem:[%s540_s3 + $0x78] sm:$0xff]  ;;  %vm224_vm2 = vcmask 7168  }
  0x11   :  { %302 = vmatprep.subr.mxu1 %v363_v1  ;;  %334 = vmatprep.mubr.msk.f32.mxu1 %vm364_vm0, %v363_v1  ;;  %v46_v7 = vld [vmem:[%s538_s1 + $0x58] sm:$0xff]  ;;  %v145_v8 = vld [vmem:[%s540_s3 + $0x70] sm:$0xff]  ;;  %v144_v9 = vld [vmem:[%s540_s3 + $0x68] sm:$0xff] }
  0x12   :  { %268 = vmatpush3.msra.mxu0 %v50_v2  ;;  %303 = vmatpush3.msra.mxu1 %v146_v6  ;;  %v45_v10 = vld [vmem:[%s538_s1 + $0x50] sm:$0xff]  ;;  %v143_v11 = vld [vmem:[%s540_s3 + $0x60] sm:$0xff]  ;;  %v44_v12 = vld [vmem:[%s538_s1 + $0x48] sm:$0xff] }
  0x13   :  { %269 = vmatprep.subr.mxu0 %v363_v1  ;;  %304 = vmatprep.subr.mxu1 %v363_v1  ;;  %v142_v13 = vld [vmem:[%s540_s3 + $0x58] sm:$0xff]  ;;  %v43_v14 = vld [vmem:[%s538_s1 + $0x40] sm:$0xff]  ;;  %v141_v15 = vld [vmem:[%s540_s3 + $0x50] sm:$0xff] }
  0x14   :  { %270 = vmatpush3.msra.mxu0 %v49_v3  ;;  %305 = vmatpush3.msra.mxu1 %v145_v8  ;;  %v42_v16 = vld [vmem:[%s538_s1 + $0x38] sm:$0xff]  ;;  %v140_v17 = vld [vmem:[%s540_s3 + $0x48] sm:$0xff]  ;;  %v41_v18 = vld [vmem:[%s538_s1 + $0x30] sm:$0xff] }
  0x15   :  { %271 = vmatprep.subr.mxu0 %v363_v1  ;;  %306 = vmatprep.subr.mxu1 %v363_v1  ;;  %v139_v19 = vld [vmem:[%s540_s3 + $0x40] sm:$0xff]  ;;  %v40_v20 = vld [vmem:[%s538_s1 + $0x28] sm:$0xff]  ;;  %v138_v21 = vld [vmem:[%s540_s3 + $0x38] sm:$0xff] }
  0x16   :  { %272 = vmatpush3.msra.mxu0 %v48_v4  ;;  %307 = vmatpush3.msra.mxu1 %v144_v9  ;;  %v39_v22 = vld [vmem:[%s538_s1 + $0x20] sm:$0xff]  ;;  %v137_v23 = vld [vmem:[%s540_s3 + $0x30] sm:$0xff]  ;;  %v38_v24 = vld [vmem:[%s538_s1 + $0x18] sm:$0xff] }
  0x17   :  { %273 = vmatprep.subr.mxu0 %v363_v1  ;;  %308 = vmatprep.subr.mxu1 %v363_v1  ;;  %v136_v25 = vld [vmem:[%s540_s3 + $0x28] sm:$0xff]  ;;  %v37_v26 = vld [vmem:[%s538_s1 + $0x10] sm:$0xff]  ;;  %v135_v27 = vld [vmem:[%s540_s3 + $0x20] sm:$0xff] }
  0x18   :  { %274 = vmatpush3.msra.mxu0 %v47_v5  ;;  %309 = vmatpush3.msra.mxu1 %v143_v11  ;;  %v36_v28 = vld [vmem:[%s538_s1 + $0x8] sm:$0xff]  ;;  %v134_v29 = vld [vmem:[%s540_s3 + $0x18] sm:$0xff]  ;;  %v35_v30 = vld [vmem:[%s538_s1] sm:$0xff] }
  0x19   :  { %275 = vmatprep.subr.mxu0 %v363_v1  ;;  %310 = vmatprep.subr.mxu1 %v363_v1  ;;  %v34_v31 = vld [vmem:[#allocation3] sm:$0xff]  ;;  %v133_v32 = vld [vmem:[%s540_s3 + $0x10] sm:$0xff]  ;;  %v231_v35 = vld [vmem:[%s539_s2] ss:$0 sm:$0xff] }
  0x1a   :  { %276 = vmatpush3.msra.mxu0 %v46_v7  ;;  %311 = vmatpush3.msra.mxu1 %v142_v13  ;;  %v132_v33 = vld [vmem:[%s540_s3 + $0x8] sm:$0xff]  ;;  %v131_v34 = vld [vmem:[%s540_s3] sm:$0xff] }
  0x1b   :  { %277 = vmatprep.subr.mxu0 %v363_v1  ;;  %312 = vmatprep.subr.mxu1 %v363_v1  ;;  %v232_v41 = vld [vmem:[#allocation2] ss:$0 sm:$0xff] }
  0x1c   :  { %278 = vmatpush3.msra.mxu0 %v45_v10  ;;  %313 = vmatpush3.msra.mxu1 %v141_v15 }
  0x1d   :  { %279 = vmatprep.subr.mxu0 %v363_v1  ;;  %314 = vmatprep.subr.mxu1 %v363_v1 }
  0x1e   :  { %280 = vmatpush3.msra.mxu0 %v44_v12  ;;  %315 = vmatpush3.msra.mxu1 %v140_v17 }
  0x1f   :  { %281 = vmatprep.subr.mxu0 %v363_v1  ;;  %316 = vmatprep.subr.mxu1 %v363_v1 }
  0x20   :  { %282 = vmatpush3.msra.mxu0 %v43_v14  ;;  %317 = vmatpush3.msra.mxu1 %v139_v19 }
  0x21   :  { %283 = vmatprep.subr.mxu0 %v363_v1  ;;  %318 = vmatprep.subr.mxu1 %v363_v1 }
  0x22   :  { %284 = vmatpush3.msra.mxu0 %v42_v16  ;;  %319 = vmatpush3.msra.mxu1 %v138_v21 }
  0x23   :  { %285 = vmatprep.subr.mxu0 %v363_v1  ;;  %320 = vmatprep.subr.mxu1 %v363_v1 }
  0x24   :  { %286 = vmatpush3.msra.mxu0 %v41_v18  ;;  %321 = vmatpush3.msra.mxu1 %v137_v23 }
  0x25   :  { %287 = vmatprep.subr.mxu0 %v363_v1  ;;  %322 = vmatprep.subr.mxu1 %v363_v1 }
  0x26   :  { %288 = vmatpush3.msra.mxu0 %v40_v20  ;;  %323 = vmatpush3.msra.mxu1 %v136_v25 }
  0x27   :  { %289 = vmatprep.subr.mxu0 %v363_v1  ;;  %324 = vmatprep.subr.mxu1 %v363_v1 }
  0x28   :  { %290 = vmatpush3.msra.mxu0 %v39_v22  ;;  %325 = vmatpush3.msra.mxu1 %v135_v27 }
  0x29   :  { %291 = vmatprep.subr.mxu0 %v363_v1  ;;  %326 = vmatprep.subr.mxu1 %v363_v1 }
  0x2a   :  { %292 = vmatpush3.msra.mxu0 %v38_v24  ;;  %327 = vmatpush3.msra.mxu1 %v134_v29 }
  0x2b   :  { %293 = vmatprep.subr.mxu0 %v363_v1  ;;  %328 = vmatprep.subr.mxu1 %v363_v1 }
  0x2c   :  { %294 = vmatpush3.msra.mxu0 %v37_v26  ;;  %329 = vmatpush3.msra.mxu1 %v133_v32 }
  0x2d   :  { %295 = vmatprep.subr.mxu0 %v363_v1  ;;  %330 = vmatprep.subr.mxu1 %v363_v1 }
  0x2e   :  { %296 = vmatpush3.msra.mxu0 %v36_v28  ;;  %331 = vmatpush3.msra.mxu1 %v132_v33 }
  0x2f   :  { %297 = vmatprep.subr.mxu0 %v363_v1  ;;  %332 = vmatprep.subr.mxu1 %v363_v1 }
  0x30   :  { %298 = vmatpush3.msra.mxu0 %v35_v30  ;;  %333 = vmatpush3.msra.mxu1 %v131_v34 }
  0x31   :  { %300 = vmatmul.mubr.f32.vlgmr.msra.gmra.mxu0 %v34_v31 }
  0xf1   :  { %v124_v36 = vpop.f32.mrf.mxu0 }
  0xf2   :  { %v125_v37 = vadd.f32 %v231_v35, %v124_v36 }
  0xf3   :  { %v301_v38 = vpop.f32.mrf.mxu0 }
  0xf4   :  { %v129_v39 = vmul.f32 0.01, %v125_v37  ;;  %vm128_vm1 = vcmp.gt.f32.partialorder %v125_v37, 0.0 }
  0xf6   :  { %v130_v40 = vsel %vm128_vm1, %v125_v37, %v129_v39 }
  0xf7   :  { %335 = vmatmul.mubr.f32.vlgmr.msra.gmra.mxu1 %v130_v40 }
 0x1b7   :  { %v220_v42 = vpop.f32.mrf.mxu1 }
 0x1b8   :  { %v221_v43 = vadd.f32 %v232_v41, %v220_v42 }
 0x1b9   :  { %v336_v44 = vpop.f32.mrf.mxu1 }
 0x1ba   :  { %225 = vst.msk [vmem:[%s542_s5] sm:$0xff] %vm224_vm2, %v221_v43 }
 0x1bb   :  { %230 = vsyncpa [#allocation4], 1 }

</bundles_post_ra>
